<compile_context>
chip_gen: v5e
topology: v5e:2x2
jax: 0.10.0
libtpu: 0.0.40
codegen_flags: <defaults>
</compile_context>

<pallas_src>
import jax
import jax.numpy as jnp
from jax.experimental import pallas as pl
from jax.experimental.pallas import tpu as pltpu


def _vid_kernel(x_ref, w1_ref, w2_ref, w3_ref, mean_ref):
    # x_ref:    (Cin, tile_hw)   -- channels on sublanes, pixels on lanes
    # w*_ref:   PyTorch 1x1-conv weight layout (out_ch, in_ch)
    # mean_ref: (Cout, tile_hw)
    x = x_ref[...]
    h1 = jnp.maximum(
        jnp.dot(w1_ref[...], x, preferred_element_type=jnp.float32), 0.0
    )
    h2 = jnp.maximum(
        jnp.dot(w2_ref[...], h1, preferred_element_type=jnp.float32), 0.0
    )
    mean_ref[...] = jnp.dot(
        w3_ref[...], h2, preferred_element_type=jnp.float32
    ).astype(mean_ref.dtype)


def _choose_tile_hw(hw, cap=4096):
    """Largest lane-dense spatial tile: whole plane if it fits, else the
    biggest multiple-of-128 divisor of H*W not exceeding `cap`."""
    if hw <= cap:
        return hw
    t = cap - (cap % 128)
    while t >= 128:
        if hw % t == 0:
            return t
        t -= 128
    # Fallback: largest divisor of hw not exceeding cap (keeps correctness for
    # awkward spatial sizes at some store-efficiency cost).
    for t in range(cap, 0, -1):
        if hw % t == 0:
            return t
    return hw


def regressor4vid_forward(x_nchw, w1, w2, w3, soft_plus_param, eps, *, max_tile_hw=4096):
    """w1: (mid, in), w2: (mid, mid), w3: (out, mid) -- PyTorch Conv2d 1x1
    weights with the trailing 1x1 spatial dims squeezed (untransposed)."""
    N, Cin, H, W = x_nchw.shape
    Cmid = w1.shape[0]
    Cout = w3.shape[0]
    HW = H * W

    tile_hw = _choose_tile_hw(HW, max_tile_hw)
    num_tiles = HW // tile_hw

    # Pure reshape -- no NCHW<->NHWC transposes, no extra HBM traffic.
    x3d = x_nchw.reshape(N, Cin, HW)

    flops = 2 * N * HW * (Cin * Cmid + Cmid * Cmid + Cmid * Cout)
    bytes_accessed = 4 * (N * HW * (Cin + Cout) + Cin * Cmid + Cmid * Cmid + Cmid * Cout)

    mean3d = pl.pallas_call(
        _vid_kernel,
        out_shape=jax.ShapeDtypeStruct((N, Cout, HW), x_nchw.dtype),
        grid=(N, num_tiles),
        in_specs=[
            # Batch dim squeezed out of the kernel view.
            pl.BlockSpec((None, Cin, tile_hw), lambda n, j: (n, 0, j)),
            pl.BlockSpec((Cmid, Cin), lambda n, j: (0, 0)),
            pl.BlockSpec((Cmid, Cmid), lambda n, j: (0, 0)),
            pl.BlockSpec((Cout, Cmid), lambda n, j: (0, 0)),
        ],
        out_specs=pl.BlockSpec((None, Cout, tile_hw), lambda n, j: (n, 0, j)),
        compiler_params=pltpu.CompilerParams(
            # No cross-step accumulation, no constant-index output block ->
            # both axes independent (megacore-shardable).
            dimension_semantics=("parallel", "parallel"),
        ),
        cost_estimate=pl.CostEstimate(
            flops=flops, transcendentals=0, bytes_accessed=bytes_accessed
        ),
    )(x3d, w1, w2, w3)

    pred_mean = mean3d.reshape(N, Cout, H, W)
    # Variance is a tiny per-channel constant: compute once in the wrapper with
    # a numerically stable softplus (matches torch.log(1 + exp(p)) + eps).
    pred_var = (jax.nn.softplus(soft_plus_param) + eps).reshape(1, Cout, 1, 1)
    return pred_mean, pred_var


def _reference(x_nchw, w1, w2, w3, soft_plus_param, eps):
    # Pure-JAX reference mirroring the PyTorch forward.
    N, Cin, H, W = x_nchw.shape
    x2d = jnp.transpose(x_nchw, (0, 2, 3, 1)).reshape(-1, Cin)
    h1 = jnp.maximum(x2d @ w1.T, 0.0)
    h2 = jnp.maximum(h1 @ w2.T, 0.0)
    mean2d = h2 @ w3.T
    Cout = w3.shape[0]
    pred_mean = jnp.transpose(mean2d.reshape(N, H, W, Cout), (0, 3, 1, 2))
    pred_var = (jax.nn.softplus(soft_plus_param) + eps).reshape(1, Cout, 1, 1)
    return pred_mean, pred_var


if __name__ == "__main__":
    # Module hyperparameters (small, consistent with the PyTorch module).
    in_channels, middle_channels, out_channels = 4, 8, 8
    eps = 1e-5
    init_pred_var = 5.0

    key = jax.random.PRNGKey(0)
    kx, k1, k2, k3 = jax.random.split(key, 4)

    # Input feature map: NCHW, batch=2, channels=4, spatial=16x16.
    x = jax.random.normal(kx, (2, in_channels, 16, 16), dtype=jnp.float32)

    # Deterministic synthetic 1x1-conv weights (trailing spatial dims squeezed).
    w1 = 0.1 * jax.random.normal(k1, (middle_channels, in_channels), dtype=jnp.float32)
    w2 = 0.1 * jax.random.normal(k2, (middle_channels, middle_channels), dtype=jnp.float32)
    w3 = 0.1 * jax.random.normal(k3, (out_channels, middle_channels), dtype=jnp.float32)

    # soft_plus_param = log(exp(init_pred_var - eps) - 1) * ones(out_channels)
    soft_plus_param = jnp.full(
        (out_channels,), jnp.log(jnp.exp(init_pred_var - eps) - 1.0), dtype=jnp.float32
    )

    pred_mean, pred_var = regressor4vid_forward(x, w1, w2, w3, soft_plus_param, eps)
    jax.block_until_ready((pred_mean, pred_var))

    ref_mean, ref_var = _reference(x, w1, w2, w3, soft_plus_param, eps)
    assert pred_mean.shape == (2, out_channels, 16, 16)
    assert pred_var.shape == (1, out_channels, 1, 1)
    assert jnp.allclose(pred_mean, ref_mean, atol=1e-5, rtol=1e-5)
    assert jnp.allclose(pred_var, ref_var, atol=1e-5, rtol=1e-5)

    print("KERNEL_OK")
</pallas_src>

<mosaic_0001>
module attributes {stable_mosaic.version = 11 : i64} {
  func.func @_vid_kernel(%arg0: i32, %arg1: i32, %arg2: memref<1x4x256xf32, #tpu.memory_space<vmem>>, %arg3: memref<8x4xf32, #tpu.memory_space<vmem>>, %arg4: memref<8x8xf32, #tpu.memory_space<vmem>>, %arg5: memref<8x8xf32, #tpu.memory_space<vmem>>, %arg6: memref<1x8x256xf32, #tpu.memory_space<vmem>>) attributes {dimension_semantics = [#tpu.dimension_semantics<parallel>, #tpu.dimension_semantics<parallel>], iteration_bounds = array<i64: 2, 1>, scalar_prefetch = 0 : i64, scratch_operands = 0 : i64, tpu.core_type = #tpu.core_type<tc>, window_params = [{transform_indices = @transform_0, window_bounds = array<i64: 1, 4, 256>}, {pipeline_mode = #tpu.pipeline_mode<synchronous>, transform_indices = @transform_1, window_bounds = array<i64: 8, 4>}, {pipeline_mode = #tpu.pipeline_mode<synchronous>, transform_indices = @transform_2, window_bounds = array<i64: 8, 8>}, {pipeline_mode = #tpu.pipeline_mode<synchronous>, transform_indices = @transform_3, window_bounds = array<i64: 8, 8>}, {transform_indices = @transform_4, window_bounds = array<i64: 1, 8, 256>}]} {
    %c0 = arith.constant 0 : index
    %c0_0 = arith.constant 0 : index
    %c0_1 = arith.constant 0 : index
    %0 = vector.load %arg2[%c0, %c0_0, %c0_1] : memref<1x4x256xf32, #tpu.memory_space<vmem>>, vector<1x4x256xf32>
    %1 = vector.shape_cast %0 : vector<1x4x256xf32> to vector<4x256xf32>
    %c0_2 = arith.constant 0 : index
    %c0_3 = arith.constant 0 : index
    %2 = vector.load %arg3[%c0_2, %c0_3] : memref<8x4xf32, #tpu.memory_space<vmem>>, vector<8x4xf32>
    %cst = arith.constant dense<0.000000e+00> : vector<8x256xf32>
    %3 = tpu.matmul %2, %1, %cst {dimension_numbers = #tpu.dot_dimension_numbers<[1], [0], [0], [1], [0, 0, 1, 1], [], []>} : vector<8x4xf32>, vector<4x256xf32>, vector<8x256xf32> -> vector<8x256xf32>
    %cst_4 = arith.constant 0.000000e+00 : f32
    %4 = vector.broadcast %cst_4 : f32 to vector<8x256xf32>
    %5 = arith.maximumf %3, %4 : vector<8x256xf32>
    %c0_5 = arith.constant 0 : index
    %c0_6 = arith.constant 0 : index
    %6 = vector.load %arg4[%c0_5, %c0_6] : memref<8x8xf32, #tpu.memory_space<vmem>>, vector<8x8xf32>
    %cst_7 = arith.constant dense<0.000000e+00> : vector<8x256xf32>
    %7 = tpu.matmul %6, %5, %cst_7 {dimension_numbers = #tpu.dot_dimension_numbers<[1], [0], [0], [1], [0, 0, 1, 1], [], []>} : vector<8x8xf32>, vector<8x256xf32>, vector<8x256xf32> -> vector<8x256xf32>
    %cst_8 = arith.constant 0.000000e+00 : f32
    %8 = vector.broadcast %cst_8 : f32 to vector<8x256xf32>
    %9 = arith.maximumf %7, %8 : vector<8x256xf32>
    %c0_9 = arith.constant 0 : index
    %c0_10 = arith.constant 0 : index
    %10 = vector.load %arg5[%c0_9, %c0_10] : memref<8x8xf32, #tpu.memory_space<vmem>>, vector<8x8xf32>
    %cst_11 = arith.constant dense<0.000000e+00> : vector<8x256xf32>
    %11 = tpu.matmul %10, %9, %cst_11 {dimension_numbers = #tpu.dot_dimension_numbers<[1], [0], [0], [1], [0, 0, 1, 1], [], []>} : vector<8x8xf32>, vector<8x256xf32>, vector<8x256xf32> -> vector<8x256xf32>
    %c0_12 = arith.constant 0 : index
    %c0_13 = arith.constant 0 : index
    %c0_14 = arith.constant 0 : index
    %12 = vector.load %arg6[%c0_12, %c0_13, %c0_14] : memref<1x8x256xf32, #tpu.memory_space<vmem>>, vector<1x8x256xf32>
    %13 = vector.shape_cast %12 : vector<1x8x256xf32> to vector<8x256xf32>
    %14 = vector.shape_cast %11 : vector<8x256xf32> to vector<1x8x256xf32>
    tpu.vector_store %arg6[%c0_12, %c0_13, %c0_14], %14 {strides = array<i32>} : memref<1x8x256xf32, #tpu.memory_space<vmem>>, vector<1x8x256xf32>,
    return
  }
  func.func @transform_0(%arg0: i32, %arg1: i32) -> (i32, i32, i32) {
    %c0_i32 = arith.constant 0 : i32
    %c0_i32_0 = arith.constant 0 : i32
    return %arg0, %c0_i32, %arg1 : i32, i32, i32
  }
  func.func @transform_1(%arg0: i32, %arg1: i32) -> (i32, i32) {
    %c0_i32 = arith.constant 0 : i32
    %c0_i32_0 = arith.constant 0 : i32
    %c0_i32_1 = arith.constant 0 : i32
    return %c0_i32, %c0_i32_0 : i32, i32
  }
  func.func @transform_2(%arg0: i32, %arg1: i32) -> (i32, i32) {
    %c0_i32 = arith.constant 0 : i32
    %c0_i32_0 = arith.constant 0 : i32
    %c0_i32_1 = arith.constant 0 : i32
    return %c0_i32, %c0_i32_0 : i32, i32
  }
  func.func @transform_3(%arg0: i32, %arg1: i32) -> (i32, i32) {
    %c0_i32 = arith.constant 0 : i32
    %c0_i32_0 = arith.constant 0 : i32
    %c0_i32_1 = arith.constant 0 : i32
    return %c0_i32, %c0_i32_0 : i32, i32
  }
  func.func @transform_4(%arg0: i32, %arg1: i32) -> (i32, i32, i32) {
    %c0_i32 = arith.constant 0 : i32
    %c0_i32_0 = arith.constant 0 : i32
    return %arg0, %c0_i32, %arg1 : i32, i32, i32
  }
}

</mosaic_0001>

<bundles_post_ra>
// kernel: tpu_custom_call.1
= control target key start
LH: loop header
LB: loop body
LE: loop exit
PB: predicated region body
PF: predicated region fallthrough
CT: control target
= control target key end

     0   :  { %9 = vsyncpa [#allocation3], 0  ;;  %s944_s0 = inlined_call_operand.hbm [shape: f32[2,4,256], index: 0, kind: input, shape index: {}]   ;;  %s945_s1 = inlined_call_operand.vmem [shape: f32[8,4], index: 1, kind: input, shape index: {}]   ;;  %s946_s2 = inlined_call_operand.vmem [shape: f32[8,8], index: 2, kind: input, shape index: {}]   ;;  %s947_s3 = inlined_call_operand.hbm [shape: f32[8,8], index: 3, kind: input, shape index: {}]   ;;  %s948_s4 = inlined_call_operand.hbm [shape: f32[2,8,256], index: 4, kind: output, shape index: {}]  }
   0x1   :  { %11 = vsyncpa [#allocation3 + $0x1], 0 }
   0x2   :  { %12 = vsyncpa [#allocation6], 0 }
   0x3   :  { %13 = vsyncpa [#allocation4], 0 }
   0x4   :  { %15 = vsyncpa [#allocation4 + $0x1], 0  ;;  %s788_s15 = smov 0   ;;  %s790_s16 = smov 0  }
   0x5   :  { %s792_s17 = smov 0   ;;  %s794_s18 = smov 0  }
   0x6   :  { %s796_s19 = smov 0   ;;  %s798_s20 = smov 0  }
   0x7 LB: > { %s514_s21 = sadd.s32 4294967295, %s760_s20   ;;  %s515_s22 = sadd.s32 4294967294, %s760_s20   ;;  %s760_s20 = sphi %s798_s20, %s21_s20   ;;  %s756_s19 = sphi %s796_s19, %s960_s19   ;;  %s752_s18 = sphi %s794_s18, %s959_s18   ;;  %s748_s17 = sphi %s792_s17, %s958_s17   ;;  %s744_s16 = sphi %s790_s16, %s957_s16   ;;  %s740_s15 = sphi %s788_s15, %s956_s15  }
   0x8   : > { %p55_p0 = scmp.ne.s32.totalorder %s744_s16, %s740_s15  ;;  %p822_p1 = scmp.eq.s32.totalorder %s514_s21, 0 }
   0x9   : > { %p826_p2 = scmp.eq.s32.totalorder %s514_s21, 1  ;;  %p150_p3 = scmp.eq.s32.totalorder %s515_s22, 1 }
   0xa   : > { %p832_p4 = por %p822_p1, %p55_p0  ;;  %p516_p5 = scmp.ge.s32.totalorder %s760_s20, 1 }
   0xb   : > { %p837_p6 = por %p150_p3, %p55_p0  ;;  %p157_p7 = scmp.lt.s32.totalorder %s760_s20, 3 }
   0xc   : > { %s175_s29 = sshll.u32 %s947_s3, 4  ;;  %p518_p9 = scmp.ge.s32.totalorder %s760_s20, 2  ;;  %s176_s29 = int_to_ptr.hbm [resolvable:$true] %s175_s29 }
   0xd   : > { %p845_p8 = pnand %p516_p5, %p157_p7  ;;  %s762_s5 = smov [#allocation5]  }
   0xe   : > { %s177_s6 = sshll.u32 %s762_s5, 4  ;;  %s33_s7 = sadd.s32 1, %s756_s19  ;;  %s178_s6 = int_to_ptr.vmem [resolvable:$true] %s177_s6 }
   0xf   : > { %p549_p10 = pneg %p845_p8  ;;  %p35_p12 = scmp.ge.s32.totalorder %s33_s7, 2 }
  0x10   : > { %s42_s8 = sadd.s32 1, %s748_s17  ;;  %p49_p13 = scmp.ne.s32.totalorder %s748_s17, %s744_s16 }
  0x11   : > { %p550_p11 = pnand %p549_p10, %p822_p1  ;;  %p50_p0 = scmp.eq.s32.totalorder %s760_s20, 0 }
  0x12   : > { %s962_s7 = smov (%p35_p12, %s33_s7), 0  ;;  %p867_p5 = por %p826_p2, %p49_p13 }
  0x13   : > { %552 = dma.hbm_to_vmem [thread:$0]  (!%p550_p11), %s176_s29, 128, %s178_s6, [#allocation6]  }
  0x14   : > { %p861_p3 = por %p50_p0, %p49_p13  ;;  %s37_s11 = ssub.s32 %s756_s19, %s962_s7 }
  0x15   : > { %p562_p7 = scmp.lt.s32.totalorder %s760_s20, 2  ;;  %p40_p10 = scmp.eq.s32.totalorder %s37_s11, 0 }
  0x16   : > { %s188_s12 = sand.u32 1, %s748_s17   ;;  %s539_s21 = sshll.u32 %s756_s19, 3 }
  0x17   : > { %s519_s13 = sshll.u32 %s188_s12, 3  ;;  %s199_s28 = scalar_lea.hbm %s944_s0, %s539_s21 }
  0x18   : > { %s876_s14 = scalar_select %p40_p10, %s748_s17, %s42_s8  }
  0x19   : > { %s192_s29 = scalar_lea.vmem [#allocation2], %s519_s13  ;;  %s201_s24 = sshll.u32 %s199_s28, 4  ;;  %s202_s24 = int_to_ptr.hbm [resolvable:$true] %s201_s24 }
  0x1a   : > { %s203_s5 = sshll.u32 %s192_s29, 4  ;;  %p554_p2 = pnand %p562_p7, %p861_p3  ;;  %s204_s5 = int_to_ptr.vmem [resolvable:$true] %s203_s5 }
  0x1b   : > { %s189_s6 = scalar_lea.sflag [#allocation3], %s188_s12  ;;  %212 = sbr.rel (%p845_p8) target bundleno = 439 (0x1b7), region = 36 }
  0x1c   : > { %556 = dma.hbm_to_vmem [thread:$0]  (!%p554_p2), %s202_s24, 128, %s204_s5, %s189_s6  }
  0x1d   : > { %s887_s8 = sand.u32 (!%p845_p8), 1, %s744_s16  }
  0x1e   : > { %s523_s11 = sshll.u32 (!%p845_p8), %s887_s8, 3  ;;  %s215_s21 = scalar_lea.sflag (!%p845_p8), [#allocation3], %s887_s8 }
  0x1f   : > { %s218_s13 = scalar_lea.vmem (!%p845_p8), [#allocation2], %s523_s11 }
  0x20   : > { %727 = dma.done.wait (%p832_p4), %s215_s21, 128  }
  0x21   : > { %729 = vsyncadd (%p832_p4), %s215_s21, 4294967168 }
  0x22   : > { %731 = dma.done.wait (%p822_p1), [#allocation6], 128  }
  0x23   : > { %733 = vsyncadd (%p822_p1), [#allocation6], 4294967168  ;;  %v251_v0 = vld [vmem:[%s218_s13] sm:$0xff]  ;;  %vm261_vm0 = vcmask 1043456   ;;  %v252_v1 = vld [vmem:[%s945_s1] sm:$0xff]  ;;  %vm257_vm1 = vcmask 31744  }
  0x24   : > { %254 = vst [vmem:[#allocation1] ss:$2 sm:$0xff] %v251_v0  ;;  %v308_v8 = vld [vmem:[%s946_s2] sm:$0xff]  ;;  %vm309_vm2 = vcmask 64512   ;;  %v355_v13 = vld [vmem:[#allocation5] sm:$0xff]  ;;  %s525_s12 = sshll.u32 %s887_s8, 4 }
  0x25   : > { %s540_s22 = sshll.u32 %s752_s18, 4  ;;  %s248_s5 = scalar_lea.vmem [#allocation7], %s525_s12 }
  0x26   : > { %s415_s29 = scalar_lea.hbm %s948_s4, %s540_s22  ;;  %s417_s24 = sshll.u32 %s248_s5, 4  ;;  %s418_s24 = int_to_ptr.vmem [resolvable:$true] %s417_s24 }
  0x27   : > { %s419_s6 = sshll.u32 %s415_s29, 4  ;;  %s402_s11 = scalar_lea.sflag [#allocation4], %s887_s8  ;;  %s420_s6 = int_to_ptr.hbm [resolvable:$true] %s419_s6 }
  0x28   : > { %s688_s21 = sshra.s32 %s420_s6, 4  ;;  %s694_s9 = scalar_lea.hbm %s948_s4, 32  ;;  %s689_s21 = int_to_ptr.hbm [resolvable:$true] %s688_s21 }
  0x29   : > { %s690_s13 = scalar_lea.hbm %s689_s21, 16  ;;  %p695_p11 = scmp.lt.s32.totalorder %s689_s21, %s948_s4 }
  0x2a   : > { %p691_p1 = scmp.ne.s32.totalorder %s689_s21, %s690_s13  ;;  %p696_p12 = scmp.lt.s32.totalorder %s694_s9, %s690_s13 }
  0x2b   : > { %v255_v2 = vld.sshfl [vmem:[#allocation1] sm:$0xff pattern:$0x75316420]  ;;  %v256_v3 = vld.sshfl [vmem:[#allocation1 + $0x8] sm:$0xff pattern:$0x75316420] }
  0x2c   : > { %526 = vmatpush.msk.msra.mxu0 %vm261_vm0, %v255_v2  ;;  %528 = vmatpush.msk.msra.mxu1 %vm261_vm0, %v256_v3  ;;  %p692_p4 = pnand %p691_p1, %p867_p5  ;;  %p697_p13 = por %p696_p12, %p695_p11 }
  0x2d   : > { %527 = vmatmul.msk.f32.vlgmr.msra.gmra.mxu0 %vm257_vm1, %v252_v1  ;;  %529 = vmatmul.msk.f32.vlgmr.msra.gmra.mxu1 %vm257_vm1, %v252_v1 }
  0x2e   : > { %p693_p8 = pneg %p692_p4 }
  0x30   : > { %p698_p0 = pnand %p697_p13, %p693_p8 }
  0xaa   : > { %v283_v4 = vpop.f32.mrf.mxu0  ;;  %v303_v5 = vpop.f32.mrf.mxu1 }
  0xab   : > { %v306_v6 = vmax.f32 %v283_v4, 0.0  ;;  %v307_v7 = vmax.f32 %v303_v5, 0.0 }
  0xad   : > { %328 = vmatpush.msra.mxu2 %v306_v6  ;;  %348 = vmatpush.msra.mxu3 %v307_v7 }
  0xae   : > { %530 = vmatmul.msk.f32.vlgmr.msra.gmra.mxu2 %vm309_vm2, %v308_v8  ;;  %531 = vmatmul.msk.f32.vlgmr.msra.gmra.mxu3 %vm309_vm2, %v308_v8 }
 0x131   : > { %v330_v9 = vpop.f32.mrf.mxu2  ;;  %v350_v10 = vpop.f32.mrf.mxu3 }
 0x132   : > { %v353_v11 = vmax.f32 %v330_v9, 0.0  ;;  %v354_v12 = vmax.f32 %v350_v10, 0.0 }
 0x134   : > { %374 = vmatpush.msrb.mxu0 %v353_v11  ;;  %394 = vmatpush.msrb.mxu1 %v354_v12 }
 0x135   : > { %532 = vmatmul.msk.f32.vlgmr.msrb.gmra.mxu0 %vm309_vm2, %v355_v13  ;;  %533 = vmatmul.msk.f32.vlgmr.msrb.gmra.mxu1 %vm309_vm2, %v355_v13 }
 0x1b2   : > { %v376_v14 = vpop.f32.mrf.mxu0  ;;  %v396_v15 = vpop.f32.mrf.mxu1 }
 0x1b3   : > { %399 = vst [vmem:[%s248_s5] sm:$0xff] %v376_v14 }
 0x1b4   : > { %400 = vst [vmem:[%s248_s5 + $0x8] sm:$0xff] %v396_v15 }
 0x1b5   : > { %701 = shalt.err (!%p698_p0)
}
 0x1b6   : > { %547 = dma.vmem_to_hbm [thread:$0]  (%p867_p5), %s418_s24, 256, %s420_s6, %s402_s11  }
 0x1b7 PF: > { %s431_s8 = sand.u32 1, %s740_s15   ;;  %p558_p3 = pnand %p518_p9, %p837_p6 }
 0x1b8   : > { %s432_s12 = scalar_lea.sflag [#allocation4], %s431_s8 }
 0x1b9   : > { %p559_p7 = pneg %p558_p3 }
 0x1bb   : > { %735 = dma.done.wait (%p559_p7), %s432_s12, 256  }
 0x1bc   : > { %737 = vsyncadd (%p559_p7), %s432_s12, 4294967040  ;;  %s21_s20 = sadd.s32 1, %s760_s20   ;;  %s956_s15 = smov %s744_s16 }
 0x1bd   : > { %p18_p10 = scmp.ge.s32.totalorder %s21_s20, 4   ;;  %s957_s16 = smov %s748_s17 }
 0x1be   : > { %s958_s17 = smov %s876_s14  ;;  %s959_s18 = smov %s756_s19 }
 0x1bf   : > { %s960_s19 = smov %s962_s7  ;;  %20 = sbr.rel (!%p18_p10) target bundleno = 7 (0x7), region = 85 }
 0x1c4   :  { %438 = vsyncpa [#allocation3], 1 }
 0x1c5   :  { %440 = vsyncpa [#allocation3 + $0x1], 1 }
 0x1c6   :  { %441 = vsyncpa [#allocation6], 1 }
 0x1c7   :  { %442 = vsyncpa [#allocation4], 1 }
 0x1c8   :  { %444 = vsyncpa [#allocation4 + $0x1], 1 }

</bundles_post_ra>
